<compile_context>
chip_gen: v5e
topology: v5e:2x2
jax: 0.10.0
libtpu: 0.0.40
codegen_flags: <defaults>
</compile_context>

<pallas_src>
import jax
import jax.numpy as jnp
from jax.experimental import pallas as pl
from jax.experimental.pallas import tpu as pltpu


_LANES = 128                      # lane-dense last dim: multiple of 128 -> unmasked vst
_BLOCK_BYTES = 2 * 1024 * 1024    # ~2 MiB/block; ~8 MiB double-buffered in+out


def _copy_kernel(x_ref, o_ref):
    # Straight pass-through tile copy. Subclasses with real forward compute
    # would replace this body; the store is a single unmasked vst per vreg row.
    o_ref[...] = x_ref[...]


def _sublane_multiple(dtype) -> int:
    # Minimum row granularity so a partial (non-full-extent) block satisfies
    # the (8,128)-style layout rule for this dtype (8 f32 / 16 bf16 / 32 int8).
    return max(8, 32 // jnp.dtype(dtype).itemsize)


def _round_up(v: int, m: int) -> int:
    return ((v + m - 1) // m) * m


def _identity_pallas_2d(x2d: jax.Array) -> jax.Array:
    """Tiled, pipelined identity copy over a lane-dense 2-D array."""
    rows, cols = x2d.shape
    dtype = x2d.dtype
    itemsize = jnp.dtype(dtype).itemsize
    sub = _sublane_multiple(dtype)

    # Largest block row-count that keeps the block at ~2 MiB (multiple of sub).
    max_rows = max(sub, (_BLOCK_BYTES // (cols * itemsize)) // sub * sub)

    if rows < 2 * sub:
        # Too small for two >= sub-row blocks: use the full extent (exempt from
        # the sublane-divisibility rule) with grid == 1.
        br = rows
    else:
        # Cap the block so the grid has >= 2 entries: lets "parallel" shard the
        # row axis across both TensorCores on v7x even for medium inputs.
        br = min(max_rows, _round_up(pl.cdiv(rows, 2), sub))

    grid = (pl.cdiv(rows, br),)
    return pl.pallas_call(
        _copy_kernel,
        out_shape=jax.ShapeDtypeStruct((rows, cols), dtype),
        grid=grid,
        in_specs=[pl.BlockSpec((br, cols), lambda i: (i, 0))],
        out_specs=pl.BlockSpec((br, cols), lambda i: (i, 0)),
        compiler_params=pltpu.CompilerParams(
            dimension_semantics=("parallel",),
        ),
        # Pure memcpy: 1 read + 1 write pass over the slab.
        cost_estimate=pl.CostEstimate(
            flops=0,
            transcendentals=0,
            bytes_accessed=2 * rows * cols * itemsize,
        ),
    )(x2d)


@jax.jit
def pallas_identity(x: jax.Array) -> jax.Array:
    """Identity pass-through routed through the tiled Pallas copy kernel.

    No pad/slice round trip: the 128-aligned prefix is reshaped (metadata only)
    and copied by the kernel; any <128-element ragged tail is concatenated with
    plain XLA (tiny, never a full extra HBM pass).
    """
    orig_shape = x.shape
    flat = x.reshape(-1)
    total = flat.shape[0]                    # static under jit
    main = (total // _LANES) * _LANES

    pieces = []
    if main:
        body = flat if main == total else flat[:main]
        body2d = body.reshape(main // _LANES, _LANES)
        pieces.append(_identity_pallas_2d(body2d).reshape(-1))
    if main != total:
        pieces.append(flat[main:])           # ragged tail (< 128 elements)

    y = pieces[0] if len(pieces) == 1 else jnp.concatenate(pieces)
    return y.reshape(orig_shape)


class BaseModel:
    """JAX/Pallas port of model/basemodel.py::BaseModel.

    Only the data-path pieces (setInput / forward / test) are meaningful for a
    kernel port; checkpoint I/O, optimizer, LR-schedule and autograd plumbing
    have no Pallas equivalent and are intentionally omitted.
    """

    def __init__(self):
        self.model_names = []
        self.opt = None
        self.input = None
        self.edge = None
        self.output = None

    def init(self, opt=None):
        # No device / save-dir bookkeeping needed for the synthetic kernel.
        self.opt = opt
        self.model_names = []

    def setInput(self, inputData, edge):
        self.input = inputData
        self.edge = edge

    def forward(self):
        # Reference forward() is `pass` — a semantic no-op.  Per the perf
        # review the no-op forward short-circuits: the stored input IS the
        # output, with no kernel launch and no HBM traffic.  Subclasses with
        # real compute should route through pallas_identity-style kernels.
        if self.input is None:
            return None
        self.output = self.input
        return None  # matches PyTorch forward() returning None

    def forward_pallas(self):
        # Optional explicit data path: run the stored input through the tiled
        # Pallas identity kernel (what a compute-bearing subclass would extend).
        if self.input is None:
            return None
        self.output = pallas_identity(self.input)
        return None

    def test(self):
        # torch.no_grad() has no analogue needed here (no autograd tracing).
        self.forward()


if __name__ == "__main__":
    key = jax.random.PRNGKey(0)
    k1, k2 = jax.random.split(key)
    # NCHW input consistent with an image-to-image model: [2, 4, 16, 16]
    x = jax.random.normal(k1, (2, 4, 16, 16), dtype=jnp.float32)
    edge = jax.random.normal(k2, (2, 1, 16, 16), dtype=jnp.float32)

    model = BaseModel()
    model.init(opt=None)
    model.setInput(x, edge)

    # 1) The module-faithful no-op forward: short-circuits, no kernel launch.
    model.test()
    assert model.output is x  # zero-cost pass-through

    # 2) Exercise the Pallas identity kernel once and verify bit-exactness.
    out = jax.block_until_ready(pallas_identity(x))
    assert out.shape == x.shape and out.dtype == x.dtype
    assert bool(jnp.all(out == x))

    print("KERNEL_OK")
</pallas_src>

<mosaic_0001>
module attributes {stable_mosaic.version = 11 : i64} {
  func.func @_copy_kernel(%arg0: i32, %arg1: memref<8x128xf32, #tpu.memory_space<vmem>>, %arg2: memref<8x128xf32, #tpu.memory_space<vmem>>) attributes {dimension_semantics = [#tpu.dimension_semantics<parallel>], iteration_bounds = array<i64: 2>, scalar_prefetch = 0 : i64, scratch_operands = 0 : i64, tpu.core_type = #tpu.core_type<tc>, window_params = [{transform_indices = @transform_0, window_bounds = array<i64: 8, 128>}, {transform_indices = @transform_1, window_bounds = array<i64: 8, 128>}]} {
    %c0 = arith.constant 0 : index
    %c0_0 = arith.constant 0 : index
    %0 = vector.load %arg1[%c0, %c0_0] : memref<8x128xf32, #tpu.memory_space<vmem>>, vector<8x128xf32>
    %c0_1 = arith.constant 0 : index
    %c0_2 = arith.constant 0 : index
    %1 = vector.load %arg2[%c0_1, %c0_2] : memref<8x128xf32, #tpu.memory_space<vmem>>, vector<8x128xf32>
    tpu.vector_store %arg2[%c0_1, %c0_2], %0 {strides = array<i32>} : memref<8x128xf32, #tpu.memory_space<vmem>>, vector<8x128xf32>,
    return
  }
  func.func @transform_0(%arg0: i32) -> (i32, i32) {
    %c0_i32 = arith.constant 0 : i32
    %c0_i32_0 = arith.constant 0 : i32
    return %arg0, %c0_i32 : i32, i32
  }
  func.func @transform_1(%arg0: i32) -> (i32, i32) {
    %c0_i32 = arith.constant 0 : i32
    %c0_i32_0 = arith.constant 0 : i32
    return %arg0, %c0_i32 : i32, i32
  }
}

</mosaic_0001>

<bundles_post_ra>
// kernel: pallas_identity.1
= control target key start
LH: loop header
LB: loop body
LE: loop exit
PB: predicated region body
PF: predicated region fallthrough
CT: control target
= control target key end

     0   :  { %s188_s6 = smov 0   ;;  %s208_s0 = inlined_call_operand.vmem [shape: f32[16,128], index: 0, kind: input, shape index: {}]   ;;  %s209_s1 = inlined_call_operand.vmem [shape: f32[16,128], index: 1, kind: output, shape index: {}]  }
   0x1 LB: > { %s167_s7 = sadd.s32 4294967295, %s190_s6   ;;  %p171_p0 = scmp.ge.s32.totalorder %s190_s6, 1  ;;  %s190_s6 = sphi %s188_s6, %s11_s6  }
   0x2   : > { %p86_p1 = scmp.lt.s32.totalorder %s190_s6, 3 }
   0x4   : > { %p87_p2 = pnand %p171_p0, %p86_p1 }
   0x5   : > { %p104_p3 = scmp.lt.s32.totalorder (!%p87_p2), %s167_s7, 1 }
   0x6   : > { %90 = sbr.rel (%p87_p2) target bundleno = 16 (0x10), region = 24 }
   0xb   : > { %s211_s7 = smov (!%p104_p3, %s167_s7), 1 }
   0xc   : > { %s172_s8 = sshll.u32 %s211_s7, 3 }
   0xd   : > { %s107_s11 = scalar_lea.vmem %s208_s0, %s172_s8  ;;  %s111_s14 = scalar_lea.vmem %s209_s1, %s172_s8 }
   0xe   : > { %v112_v0 = vld [vmem:[%s107_s11] sm:$0xff] }
   0xf   : > { %113 = vst [vmem:[%s111_s14] sm:$0xff] %v112_v0 }
  0x10 PF: > { %s11_s6 = sadd.s32 1, %s190_s6  }
  0x11   : > { %p8_p4 = scmp.ge.s32.totalorder %s11_s6, 4  }
  0x13   :  { %10 = sbr.rel (!%p8_p4) target bundleno = 1 (0x1), region = 54 }

</bundles_post_ra>
